<compile_context>
chip_gen: v7x
topology: tpu7x:2x2x1
jax: 0.10.0
libtpu: 0.0.40
codegen_flags: <defaults>
</compile_context>

<pallas_src>
import functools

import jax
import jax.numpy as jnp
from jax import lax
from jax.experimental import pallas as pl
from jax.experimental.pallas import tpu as pltpu


def _sdml_kernel(x_ref, tcol_ref, trow_ref, loss_ref, prec_ref, *,
                 margin, num_instances):
    x = x_ref[...].astype(jnp.float32)            # (n, d)
    n, d = x.shape

    num_class = n / num_instances                 # matches torch's float division
    num_positive_pairs = float(n * (num_instances - 1))

    # ---- class-equality mask, built in-kernel from two tiny int32 vectors ----
    same = tcol_ref[...] == trow_ref[...]         # (n, n) bool, 1 = same class
    row_ids = lax.broadcasted_iota(jnp.int32, (n, n), 0)
    col_ids = lax.broadcasted_iota(jnp.int32, (n, n), 1)
    pair = jnp.logical_and(same, row_ids != col_ids)   # positive pairs, j != i

    # ---- pairwise Euclidean distances: ||xi||^2 + ||xj||^2 - 2 xi.xj ----
    y = x * x                                                             # (n, d)
    sq_col = jnp.sum(y, axis=1, keepdims=True)                            # (n, 1)
    sq_row = lax.dot_general(jnp.ones((1, d), jnp.float32), y,            # (1, n)
                             (((1,), (1,)), ((), ())),
                             preferred_element_type=jnp.float32)
    gram = lax.dot_general(x, x, (((1,), (1,)), ((), ())),                # (n, n)
                           preferred_element_type=jnp.float32)
    dist = jnp.sqrt(jnp.maximum(sq_col + sq_row - 2.0 * gram, 1e-12))     # (n, n)

    # ---- per-anchor positive distance sums (diagonal included, like torch) ---
    dist_pos_sum = jnp.sum(jnp.where(same, dist, 0.0), axis=1, keepdims=True)  # (n,1)
    sum_pos_all = jnp.sum(dist_pos_sum, axis=0, keepdims=True)                 # (1,1)
    dist_mean = sum_pos_all * (1.0 / num_positive_pairs)                       # (1,1)

    # ---- per-anchor negative exp-sums.  e is symmetric, so one lane (axis=1)
    # reduction gives the (n,1) form and a tiny ones-vector MXU contraction
    # gives the (1,n) form -- no axis-0 XLU pass over (n,n). ----
    e = jnp.where(same, 0.0, jnp.exp(margin - dist))                      # (n, n)
    nes_col = jnp.sum(e, axis=1, keepdims=True)                           # (n, 1)
    nes_row = lax.dot_general(jnp.ones((1, n), jnp.float32), e,           # (1, n)
                              (((1,), (1,)), ((), ())),
                              preferred_element_type=jnp.float32)

    # ---- fused triplet + global loss over positive pairs (vectorised loop) ---
    # beta = (1/num_class) * d_ij / dist_i_sum, with the divide replaced by a
    # per-row reciprocal (n EUP ops instead of n^2).
    inv_pos = pl.reciprocal(dist_pos_sum, approx=True) * (1.0 / num_class)   # (n,1)
    trip = jnp.clip(jnp.log(jnp.maximum(nes_col + nes_row, 1e-37)) + dist,
                    0.0, 100.0)                                              # (n,n)
    contrib = dist * inv_pos * (trip * trip) \
        + (0.005 / num_positive_pairs) * jnp.square(dist - dist_mean)
    total = jnp.where(pair, contrib, 0.0)
    loss_ref[...] = jnp.sum(jnp.sum(total, axis=1, keepdims=True),
                            axis=0, keepdims=True)

    # ---- ranking precision: hardest positive vs. easiest negative per anchor -
    big = jnp.float32(1e30)
    dist_ap = jnp.max(jnp.where(same, dist, -big), axis=1, keepdims=True)   # (n,1)
    dist_an = jnp.min(jnp.where(same, big, dist), axis=1, keepdims=True)    # (n,1)
    hits = (dist_an > dist_ap).astype(jnp.float32)
    prec_ref[...] = jnp.sum(hits, axis=0, keepdims=True) * (1.0 / n)


def _vmem_limit_bytes():
    """Raise the scoped VMEM limit toward physical capacity with headroom.

    v5e/v6e have 128 MiB physical VMEM (default scoped limit 16/32 MiB);
    v7x has 64 MiB.  Leave ~8 MiB of compiler headroom and cap at 100 MiB.
    """
    try:
        cap = int(pltpu.get_tpu_info().vmem_capacity_bytes)
    except Exception:
        cap = 64 * 1024 * 1024
    if cap <= 0:
        cap = 64 * 1024 * 1024
    return int(min(cap - 8 * 1024 * 1024, 100 * 1024 * 1024))


def sdml_triplet_loss(inputs, targets, margin=0.0, num_instances=4):
    """Returns (loss, prec) exactly like SDMLTripletLoss.forward."""
    if int(num_instances) <= 1:
        raise ValueError("num_instances must be > 1 "
                         "(otherwise num_positive_pairs == 0).")
    x = inputs.astype(jnp.float32)
    n = x.shape[0]
    t = targets.astype(jnp.int32)
    t_col = t.reshape(n, 1)
    t_row = t.reshape(1, n)

    kernel = functools.partial(_sdml_kernel, margin=float(margin),
                               num_instances=int(num_instances))
    loss, prec = pl.pallas_call(
        kernel,
        out_shape=(jax.ShapeDtypeStruct((1, 1), jnp.float32),
                   jax.ShapeDtypeStruct((1, 1), jnp.float32)),
        in_specs=[pl.BlockSpec(memory_space=pltpu.MemorySpace.VMEM),
                  pl.BlockSpec(memory_space=pltpu.MemorySpace.VMEM),
                  pl.BlockSpec(memory_space=pltpu.MemorySpace.VMEM)],
        out_specs=(pl.BlockSpec(memory_space=pltpu.MemorySpace.VMEM),
                   pl.BlockSpec(memory_space=pltpu.MemorySpace.VMEM)),
        compiler_params=pltpu.CompilerParams(
            vmem_limit_bytes=_vmem_limit_bytes()),
    )(x, t_col, t_row)
    return loss[0, 0], prec[0, 0]


def _reference(inputs, targets, margin=0.0, num_instances=4):
    """Pure-JAX replica of the PyTorch forward (for a sanity check)."""
    x = inputs.astype(jnp.float32)
    n = x.shape[0]
    num_class = n / num_instances
    num_positive_pairs = n * (num_instances - 1)
    gram = jnp.dot(x, x.T, precision=jax.lax.Precision.HIGHEST)
    sq = jnp.diagonal(gram)
    dist = jnp.sqrt(jnp.maximum(sq[:, None] + sq[None, :] - 2.0 * gram, 1e-12))
    mask = (targets[:, None] == targets[None, :])
    eye = jnp.eye(n, dtype=bool)
    pair_mask = mask & ~eye
    dist_pos_sum = jnp.sum(jnp.where(mask, dist, 0.0), axis=1, keepdims=True)
    dist_mean = jnp.sum(dist_pos_sum) / num_positive_pairs
    e = jnp.where(mask, 0.0, jnp.exp(margin - dist))
    nes = jnp.sum(e, axis=1)
    beta = (1.0 / num_class) * dist / dist_pos_sum
    triplet = jnp.log(nes[:, None] + nes[None, :]) + dist
    loss_ij = beta * jnp.square(jnp.clip(triplet, 0.0, 100.0))
    loss_global = (0.005 / num_positive_pairs) * jnp.square(dist - dist_mean)
    loss = jnp.sum(jnp.where(pair_mask, loss_ij + loss_global, 0.0))
    dist_ap = jnp.max(jnp.where(mask, dist, -jnp.inf), axis=1)
    dist_an = jnp.min(jnp.where(mask, jnp.inf, dist), axis=1)
    prec = jnp.mean((dist_an > dist_ap).astype(jnp.float32))
    return loss, prec


if __name__ == "__main__":
    key = jax.random.PRNGKey(0)
    n, d, num_instances = 8, 32, 4
    x = jax.random.normal(key, (n, d), dtype=jnp.float32)
    # num_instances samples per class -> n // num_instances classes
    targets = jnp.repeat(jnp.arange(n // num_instances, dtype=jnp.int32),
                         num_instances)

    loss, prec = sdml_triplet_loss(x, targets, margin=0.0,
                                   num_instances=num_instances)
    jax.block_until_ready((loss, prec))

    ref_loss, ref_prec = _reference(x, targets, margin=0.0,
                                    num_instances=num_instances)
    assert bool(jnp.isfinite(loss)) and bool(jnp.isfinite(prec))
    assert jnp.allclose(loss, ref_loss, rtol=2e-2, atol=1e-3), (loss, ref_loss)
    assert jnp.allclose(prec, ref_prec), (prec, ref_prec)

    print("KERNEL_OK")
</pallas_src>

<mosaic_0001>
module attributes {stable_mosaic.version = 11 : i64} {
  func.func @_sdml_kernel(%arg0: memref<8x32xf32, #tpu.memory_space<vmem>>, %arg1: memref<8x1xi32, #tpu.memory_space<vmem>>, %arg2: memref<1x8xi32, #tpu.memory_space<vmem>>, %arg3: memref<1x1xf32, #tpu.memory_space<vmem>>, %arg4: memref<1x1xf32, #tpu.memory_space<vmem>>) attributes {dimension_semantics = [], scalar_prefetch = 0 : i64, scratch_operands = 0 : i64, tpu.core_type = #tpu.core_type<tc>} {
    %c0 = arith.constant 0 : index
    %c0_0 = arith.constant 0 : index
    %0 = vector.load %arg0[%c0, %c0_0] : memref<8x32xf32, #tpu.memory_space<vmem>>, vector<8x32xf32>
    %c0_1 = arith.constant 0 : index
    %c0_2 = arith.constant 0 : index
    %1 = vector.load %arg1[%c0_1, %c0_2] : memref<8x1xi32, #tpu.memory_space<vmem>>, vector<8x1xi32>
    %c0_3 = arith.constant 0 : index
    %c0_4 = arith.constant 0 : index
    %2 = vector.load %arg2[%c0_3, %c0_4] : memref<1x8xi32, #tpu.memory_space<vmem>>, vector<1x8xi32>
    %3 = vector.broadcast %1 : vector<8x1xi32> to vector<8x8xi32>
    %4 = vector.broadcast %2 : vector<1x8xi32> to vector<8x8xi32>
    %5 = arith.cmpi eq, %3, %4 : vector<8x8xi32>
    %6 = tpu.iota {dimensions = array<i32: 0>} : vector<8x8xi32>
    %7 = tpu.iota {dimensions = array<i32: 1>} : vector<8x8xi32>
    %8 = arith.cmpi ne, %6, %7 : vector<8x8xi32>
    %9 = arith.andi %5, %8 : vector<8x8xi1>
    %10 = arith.mulf %0, %0 : vector<8x32xf32>
    %cst = arith.constant dense<0.000000e+00> : vector<8xf32>
    %11 = vector.multi_reduction <add>, %10, %cst [1] : vector<8x32xf32> to vector<8xf32>
    %12 = vector.shape_cast %11 : vector<8xf32> to vector<8x1xf32>
    %cst_5 = arith.constant 1.000000e+00 : f32
    %13 = vector.broadcast %cst_5 : f32 to vector<1x32xf32>
    %cst_6 = arith.constant dense<0.000000e+00> : vector<1x8xf32>
    %14 = tpu.matmul %13, %10, %cst_6 {dimension_numbers = #tpu.dot_dimension_numbers<[1], [1], [0], [0], [0, 0, 1, 0], [], []>} : vector<1x32xf32>, vector<8x32xf32>, vector<1x8xf32> -> vector<1x8xf32>
    %cst_7 = arith.constant dense<0.000000e+00> : vector<8x8xf32>
    %15 = tpu.matmul %0, %0, %cst_7 {dimension_numbers = #tpu.dot_dimension_numbers<[1], [1], [0], [0], [0, 0, 1, 0], [], []>} : vector<8x32xf32>, vector<8x32xf32>, vector<8x8xf32> -> vector<8x8xf32>
    %16 = vector.broadcast %12 : vector<8x1xf32> to vector<8x8xf32>
    %17 = vector.broadcast %14 : vector<1x8xf32> to vector<8x8xf32>
    %18 = arith.addf %16, %17 : vector<8x8xf32>
    %cst_8 = arith.constant 2.000000e+00 : f32
    %19 = vector.broadcast %cst_8 : f32 to vector<8x8xf32>
    %20 = arith.mulf %19, %15 : vector<8x8xf32>
    %21 = arith.subf %18, %20 : vector<8x8xf32>
    %cst_9 = arith.constant 9.99999996E-13 : f32
    %22 = vector.broadcast %cst_9 : f32 to vector<8x8xf32>
    %23 = arith.maximumf %21, %22 : vector<8x8xf32>
    %24 = math.sqrt %23 : vector<8x8xf32>
    %cst_10 = arith.constant 0.000000e+00 : f32
    %25 = vector.broadcast %cst_10 : f32 to vector<8x8xf32>
    %26 = arith.select %5, %24, %25 : vector<8x8xi1>, vector<8x8xf32>
    %cst_11 = arith.constant dense<0.000000e+00> : vector<8xf32>
    %27 = vector.multi_reduction <add>, %26, %cst_11 [1] : vector<8x8xf32> to vector<8xf32>
    %28 = vector.shape_cast %27 : vector<8xf32> to vector<8x1xf32>
    %cst_12 = arith.constant dense<0.000000e+00> : vector<1xf32>
    %29 = vector.multi_reduction <add>, %28, %cst_12 [0] : vector<8x1xf32> to vector<1xf32>
    %30 = vector.shape_cast %29 : vector<1xf32> to vector<1x1xf32>
    %cst_13 = arith.constant 0.0416666679 : f32
    %31 = vector.broadcast %cst_13 : f32 to vector<1x1xf32>
    %32 = arith.mulf %30, %31 : vector<1x1xf32>
    %cst_14 = arith.constant 0.000000e+00 : f32
    %33 = vector.broadcast %cst_14 : f32 to vector<8x8xf32>
    %34 = arith.subf %33, %24 : vector<8x8xf32>
    %35 = math.exp %34 : vector<8x8xf32>
    %cst_15 = arith.constant 0.000000e+00 : f32
    %36 = vector.broadcast %cst_15 : f32 to vector<8x8xf32>
    %37 = arith.select %5, %36, %35 : vector<8x8xi1>, vector<8x8xf32>
    %cst_16 = arith.constant dense<0.000000e+00> : vector<8xf32>
    %38 = vector.multi_reduction <add>, %37, %cst_16 [1] : vector<8x8xf32> to vector<8xf32>
    %39 = vector.shape_cast %38 : vector<8xf32> to vector<8x1xf32>
    %cst_17 = arith.constant 1.000000e+00 : f32
    %40 = vector.broadcast %cst_17 : f32 to vector<1x8xf32>
    %cst_18 = arith.constant dense<0.000000e+00> : vector<1x8xf32>
    %41 = tpu.matmul %40, %37, %cst_18 {dimension_numbers = #tpu.dot_dimension_numbers<[1], [1], [0], [0], [0, 0, 1, 0], [], []>} : vector<1x8xf32>, vector<8x8xf32>, vector<1x8xf32> -> vector<1x8xf32>
    %42 = tpu.reciprocal %28 {approx = true} : vector<8x1xf32> -> vector<8x1xf32>
    %cst_19 = arith.constant 5.000000e-01 : f32
    %43 = vector.broadcast %cst_19 : f32 to vector<8x1xf32>
    %44 = arith.mulf %42, %43 : vector<8x1xf32>
    %45 = vector.broadcast %39 : vector<8x1xf32> to vector<8x8xf32>
    %46 = vector.broadcast %41 : vector<1x8xf32> to vector<8x8xf32>
    %47 = arith.addf %45, %46 : vector<8x8xf32>
    %cst_20 = arith.constant 9.99999991E-38 : f32
    %48 = vector.broadcast %cst_20 : f32 to vector<8x8xf32>
    %49 = arith.maximumf %47, %48 : vector<8x8xf32>
    %50 = math.log %49 : vector<8x8xf32>
    %51 = arith.addf %50, %24 : vector<8x8xf32>
    %cst_21 = arith.constant 0.000000e+00 : f32
    %cst_22 = arith.constant 1.000000e+02 : f32
    %52 = vector.broadcast %cst_21 : f32 to vector<8x8xf32>
    %53 = arith.maximumf %52, %51 : vector<8x8xf32>
    %54 = vector.broadcast %cst_22 : f32 to vector<8x8xf32>
    %55 = arith.minimumf %54, %53 : vector<8x8xf32>
    %56 = vector.broadcast %44 : vector<8x1xf32> to vector<8x8xf32>
    %57 = arith.mulf %24, %56 : vector<8x8xf32>
    %58 = arith.mulf %55, %55 : vector<8x8xf32>
    %59 = arith.mulf %57, %58 : vector<8x8xf32>
    %60 = vector.broadcast %32 : vector<1x1xf32> to vector<8x8xf32>
    %61 = arith.subf %24, %60 : vector<8x8xf32>
    %62 = arith.mulf %61, %61 : vector<8x8xf32>
    %cst_23 = arith.constant 2.08333338E-4 : f32
    %63 = vector.broadcast %cst_23 : f32 to vector<8x8xf32>
    %64 = arith.mulf %63, %62 : vector<8x8xf32>
    %65 = arith.addf %59, %64 : vector<8x8xf32>
    %cst_24 = arith.constant 0.000000e+00 : f32
    %66 = vector.broadcast %cst_24 : f32 to vector<8x8xf32>
    %67 = arith.select %9, %65, %66 : vector<8x8xi1>, vector<8x8xf32>
    %cst_25 = arith.constant dense<0.000000e+00> : vector<8xf32>
    %68 = vector.multi_reduction <add>, %67, %cst_25 [1] : vector<8x8xf32> to vector<8xf32>
    %69 = vector.shape_cast %68 : vector<8xf32> to vector<8x1xf32>
    %cst_26 = arith.constant dense<0.000000e+00> : vector<1xf32>
    %70 = vector.multi_reduction <add>, %69, %cst_26 [0] : vector<8x1xf32> to vector<1xf32>
    %71 = vector.shape_cast %70 : vector<1xf32> to vector<1x1xf32>
    %c0_27 = arith.constant 0 : index
    %c0_28 = arith.constant 0 : index
    %72 = vector.load %arg3[%c0_27, %c0_28] : memref<1x1xf32, #tpu.memory_space<vmem>>, vector<1x1xf32>
    tpu.vector_store %arg3[%c0_27, %c0_28], %71 {strides = array<i32>} : memref<1x1xf32, #tpu.memory_space<vmem>>, vector<1x1xf32>,
    %cst_29 = arith.constant 0.000000e+00 : f32
    %cst_30 = arith.constant 1.000000e+30 : f32
    %73 = arith.subf %cst_29, %cst_30 : f32
    %74 = vector.broadcast %73 : f32 to vector<8x8xf32>
    %75 = arith.select %5, %24, %74 : vector<8x8xi1>, vector<8x8xf32>
    %cst_31 = arith.constant dense<0xFF800000> : vector<8xf32>
    %76 = vector.multi_reduction <maximumf>, %75, %cst_31 [1] : vector<8x8xf32> to vector<8xf32>
    %77 = vector.shape_cast %76 : vector<8xf32> to vector<8x1xf32>
    %cst_32 = arith.constant 1.000000e+30 : f32
    %78 = vector.broadcast %cst_32 : f32 to vector<8x8xf32>
    %79 = arith.select %5, %78, %24 : vector<8x8xi1>, vector<8x8xf32>
    %cst_33 = arith.constant dense<0x7F800000> : vector<8xf32>
    %80 = vector.multi_reduction <minimumf>, %79, %cst_33 [1] : vector<8x8xf32> to vector<8xf32>
    %81 = vector.shape_cast %80 : vector<8xf32> to vector<8x1xf32>
    %82 = arith.cmpf ogt, %81, %77 : vector<8x1xf32>
    %83 = arith.extui %82 : vector<8x1xi1> to vector<8x1xi32>
    %84 = arith.sitofp %83 : vector<8x1xi32> to vector<8x1xf32>
    %cst_34 = arith.constant dense<0.000000e+00> : vector<1xf32>
    %85 = vector.multi_reduction <add>, %84, %cst_34 [0] : vector<8x1xf32> to vector<1xf32>
    %86 = vector.shape_cast %85 : vector<1xf32> to vector<1x1xf32>
    %cst_35 = arith.constant 1.250000e-01 : f32
    %87 = vector.broadcast %cst_35 : f32 to vector<1x1xf32>
    %88 = arith.mulf %86, %87 : vector<1x1xf32>
    %c0_36 = arith.constant 0 : index
    %c0_37 = arith.constant 0 : index
    %89 = vector.load %arg4[%c0_36, %c0_37] : memref<1x1xf32, #tpu.memory_space<vmem>>, vector<1x1xf32>
    tpu.vector_store %arg4[%c0_36, %c0_37], %88 {strides = array<i32>} : memref<1x1xf32, #tpu.memory_space<vmem>>, vector<1x1xf32>,
    return
  }
}

</mosaic_0001>

<bundles_post_ra>
// kernel: tpu_custom_call.1
= control target key start
LH: loop header
LB: loop body
LE: loop exit
PB: predicated region body
PF: predicated region fallthrough
CT: control target
= control target key end

     0   :  { %10 = vsyncpa [#allocation3], 0  ;;  %vm36_vm0 = vcmask 261120   ;;  %v469_v1 = vmov 0.0   ;;  %s574_s0 = inlined_call_operand.vmem [shape: f32[8,32], index: 0, kind: input, shape index: {}]   ;;  %s575_s1 = inlined_call_operand.vmem [shape: s32[8,1], index: 1, kind: input, shape index: {}]   ;;  %s576_s2 = inlined_call_operand.vmem [shape: s32[1,8], index: 2, kind: input, shape index: {}]   ;;  %s577_s3 = inlined_call_operand.hbm [shape: f32[1,1], index: 3, kind: output, shape index: {0}]   ;;  %s578_s4 = inlined_call_operand.hbm [shape: f32[1,1], index: 4, kind: output, shape index: {1}]  }
   0x1   :  { %v18_v0 = vld [vmem:[%s574_s0] sm:$0xff]  ;;  %391 = vmatprep.subr.mxu0 %v469_v1  ;;  %396 = vmatprep.subr.mxu1 %v469_v1 }
   0x2   :  { %v35_v2 = vmul.f32 %v18_v0, %v18_v0 }
   0x3   :  { %11 = vsyncpa [#allocation5], 0  ;;  %397 = vmatpush3.xpose.msk.msra.mxu1 %vm36_vm0, %v18_v0  ;;  %vm470_vm1 = vmmov 0   ;;  %v471_v4 = vmov 0   ;;  %v472_v5 = vmov 1.0   ;;  %v19_v6 = vld [vmem:[%s575_s1] sm:$0xff]  ;;  %v29_v7 = vlaneseq }
   0x4   :  { %393 = vmatprep.mubr.msk.f32.mxu0 %vm470_vm1, %v469_v1  ;;  %392 = vmatpush3.xpose.msk.msra.mxu0 %vm36_vm0, %v35_v2  ;;  %v37_v3 = vsel %vm36_vm0, %v35_v2, 0.0  ;;  %v377_v27 = vld [vmem:[%s576_s2] ss:$0 sm:$0xff]  ;;  %vm205_vm5 = vcmask 64512   ;;  %vm328_vm7 = vcmask 0   ;;  %s473_s2 = smov [#allocation4]  }
   0x5   :  { %398 = vmatprep.mubr.msk.f32.mxu1 %vm470_vm1, %v469_v1  ;;  %38 = vadd.xlane.f32.xlu0 %v37_v3  ;;  %v518_v8 = vshrl.u32 %v29_v7, 7  ;;  %s365_s19 = sshll.u32 %s473_s2, 4  ;;  %s366_s19 = int_to_ptr.vmem [resolvable:$true] %s365_s19 }
   0x6   :  { %401 = vmatprep.subr.mxu0 %v469_v1  ;;  %399 = vmatmul.mubr.msk.f32.vlgmr.msra.gmra.mrb[0].mxu1 %vm36_vm0, %v18_v0  ;;  %s421_s20 = scalar_lea.vmem %s366_s19, 16  ;;  %s425_s21 = scalar_lea.vmem %s366_s19, 32 }
   0x7   :  { %412 = vset.pattern.permute.xlu0 %v471_v4  ;;  %394 = vmatmul.mubr.msk.f32.vlgmr.msra.gmra.mrb[0].mxu0 %vm36_vm0, %v472_v5  ;;  %v191_v9 = vsub.s32 0, %v518_v8  ;;  %p422_p0 = scmp.ne.s32.totalorder %s366_s19, %s421_s20  ;;  %p426_p1 = scmp.lt.s32.totalorder %s366_s19, %s366_s19 }
   0x8   :  { %403 = vmatprep.mubr.msk.f32.mxu0 %vm470_vm1, %v469_v1  ;;  %p427_p2 = scmp.lt.s32.totalorder %s425_s21, %s421_s20 }
   0xa   :  { %p428_p3 = por %p427_p2, %p426_p1 }
   0xc   :  { %p429_p4 = pnand %p428_p3, %p422_p0 }
  0x1b   :  { %22 = vperm.xlu0 %412, %v19_v6   ;;  %v32_v6 = vand.u32 127, %v29_v7 }
  0x1d   :  { %vm33_vm8 = vcmp.ne.s32.totalorder %v518_v8, %v32_v6 }
  0x92   :  { %v39_v11 = vpop.xlane.xlu0 %38 }
  0x9a   :  { %v23_v28 = vpop.permute.xlu0 %22 }
  0x9b   :  { %vm524_vm4 = vcmp.eq.s32.totalorder %v23_v28, %v377_v27 }
  0x9c   :  { %vm34_vm9 = vmand %vm524_vm4, %vm33_vm8 }
  0xd9   :  { %v185_v10 = vpop.f32.mrb[0].mxu1 }
  0xda   :  { %v112_v12 = vpop.f32.mrb[0].mxu0  ;;  %v400_v13 = vpop.f32.mrb[1].mxu1  ;;  %v194_v16 = vmul.f32 2.0, %v185_v10 }
  0xdb   :  { %v192_v14 = vrot.slane %v112_v12, %v191_v9  ;;  %v395_v15 = vpop.f32.mrb[1].mxu0 }
  0xdd   :  { %v193_v17 = vadd.f32 %v192_v14, %v39_v11 }
  0xdf   :  { %v195_v18 = vsub.f32 %v193_v17, %v194_v16 }
  0xe1   :  { %v196_v19 = vmax.f32 %v195_v18, 1e-12 }
  0xe3   :  { %413 = vrsqrt.f32 %v196_v19  ;;  %vm199_vm2 = vcmp.eq.f32.partialorder %v196_v19, inf  ;;  %v202_v22 = vand.u32 2147483648, %v196_v19  ;;  %vm201_vm3 = vcmp.eq.f32.partialorder %v196_v19, 0.0 }
  0xed   :  { %v414_v20 = vpop.eup %413 }
  0xee   :  { %v198_v21 = vmul.f32 %v414_v20, %v196_v19 }
  0xf0   :  { %v200_v23 = vsel %vm199_vm2, %v196_v19, %v198_v21 }
  0xf1   :  { %v203_v24 = vsel %vm201_vm3, %v202_v22, %v200_v23 }
  0xf2   :  { %v216_v25 = vsub.f32 0.0, %v203_v24  ;;  %v204_v33 = vsel %vm524_vm4, %v203_v24, 0.0  ;;  %v330_v35 = vsel %vm524_vm4, %v203_v24, -1e+30  ;;  %v334_v37 = vsel %vm524_vm4, 1e+30, %v203_v24 }
  0xf3   :  { %v206_v34 = vsel %vm205_vm5, %v204_v33, 0.0  ;;  %v331_v36 = vsel %vm205_vm5, %v330_v35, -inf  ;;  %v335_v38 = vsel %vm205_vm5, %v334_v37, inf }
  0xf4   :  { %v217_v26 = vmul.f32 1.442695, %v216_v25 }
  0xf6   :  { %415 = vpow2.f32 %v217_v26 }
 0x100   :  { %v416_v29 = vpop.eup %415 }
 0x101   :  { %v219_v31 = vsel %vm524_vm4, 0.0, %v416_v29 }
 0x102   :  { %402 = vmatpush3.xpose.msk.msra.mxu0 %vm205_vm5, %v219_v31  ;;  %v220_v32 = vsel %vm205_vm5, %v219_v31, 0.0 }
 0x103   :  { %221 = vadd.xlane.f32.xlu1 %v220_v32 }
 0x105   :  { %404 = vmatmul.mubr.msk.f32.vlgmr.msra.gmra.mrb[2].mxu0 %vm205_vm5, %v472_v5 }
 0x107   :  { %207 = vadd.xlane.f32.xlu1 %v206_v34 }
 0x10b   :  { %332 = vmax.xlane.f32.xlu1 %v331_v36 }
 0x10f   :  { %336 = vmin.xlane.f32.xlu1 %v335_v38 }
 0x190   :  { %v222_v39 = vpop.xlane.xlu1 %221 }
 0x194   :  { %v208_v40 = vpop.xlane.xlu1 %207 }
 0x195   :  { %v209_v51 = vrot.slane %v208_v40, 4 }
 0x197   :  { %v210_v52 = vadd.f32 %v209_v51, %v208_v40 }
 0x198   :  { %v333_v41 = vpop.xlane.xlu1 %332 }
 0x199   :  { %v211_v53 = vrot.slane %v210_v52, 2 }
 0x19b   :  { %v212_v58 = vadd.f32 %v211_v53, %v210_v52 }
 0x19c   :  { %v337_v42 = vpop.xlane.xlu1 %336 }
 0x19d   :  { %vm338_vm6 = vcmp.gt.f32.partialorder %v337_v42, %v333_v41  ;;  %v213_v60 = vrot.slane %v212_v58, 1 }
 0x19e   :  { %v384_v43 = vsel %vm338_vm6, 1.0, %v469_v1 }
 0x19f   :  { %v341_v44 = vrot.slane %v384_v43, 4  ;;  %v214_v61 = vadd.f32 %v213_v60, %v212_v58 }
 0x1a1   :  { %v342_v45 = vadd.f32 %v384_v43, %v341_v44  ;;  %v215_v62 = vmul.f32 0.041666668, %v214_v61 }
 0x1a3   :  { %v343_v46 = vrot.slane %v342_v45, 2  ;;  %v314_v3 = vsub.f32 %v203_v24, %v215_v62 }
 0x1a5   :  { %v344_v47 = vadd.f32 %v343_v46, %v342_v45 }
 0x1a7   :  { %v345_v48 = vrot.slane %v344_v47, 1 }
 0x1a9   :  { %v346_v49 = vadd.f32 %v345_v48, %v344_v47 }
 0x1ab   :  { %v347_v50 = vmul.f32 0.125, %v346_v49 }
 0x1ad   :  { %348 = vst.msk [vmem:[#allocation4] sm:$0x1] %vm328_vm7, %v347_v50 }
 0x1d8   :  { %v294_v54 = vpop.f32.mrb[2].mxu0 }
 0x1d9   :  { %v303_v55 = vrot.slane %v294_v54, %v191_v9  ;;  %v405_v56 = vpop.f32.mrb[3].mxu0  ;;  %v315_v9 = vmul.f32 %v314_v3, %v314_v3 }
 0x1db   :  { %v304_v57 = vadd.f32 %v303_v55, %v222_v39  ;;  %v316_v14 = vmul.f32 0.00020833334, %v315_v9 }
 0x1dd   :  { %v305_v59 = vmax.f32 %v304_v57, 1e-37 }
 0x1df   :  { %417 = vlog2.f32 %v305_v59 }
 0x1e0   :  { %419 = vrcp.f32 %v208_v40 }
 0x1e9   :  { %v418_v63 = vpop.eup %417 }
 0x1ea   :  { %v307_v0 = vmul.f32 0.6931472, %v418_v63  ;;  %v420_v1 = vpop.eup %419 }
 0x1eb   :  { %v299_v4 = vmul.f32 0.5, %v420_v1 }
 0x1ec   :  { %v308_v2 = vadd.f32 %v307_v0, %v203_v24 }
 0x1ed   :  { %v311_v11 = vmul.f32 %v299_v4, %v203_v24 }
 0x1ee   :  { %v309_v5 = vmax.f32 %v308_v2, 0.0 }
 0x1f0   :  { %v310_v10 = vmin.f32 %v309_v5, 100.0 }
 0x1f2   :  { %v312_v12 = vmul.f32 %v310_v10, %v310_v10 }
 0x1f4   :  { %v313_v13 = vmul.f32 %v312_v12, %v311_v11 }
 0x1f6   :  { %v317_v15 = vadd.f32 %v316_v14, %v313_v13 }
 0x1f8   :  { %v318_v16 = vsel %vm34_vm9, %v317_v15, 0.0 }
 0x1f9   :  { %v319_v17 = vsel %vm205_vm5, %v318_v16, 0.0 }
 0x1fa   :  { %320 = vadd.xlane.f32.xlu1 %v319_v17 }
 0x1fb   :  { %432 = shalt.err (!%p429_p4)
}
 0x1fc   :  { %s433_s24 = scalar_lea.hbm %s578_s4, 16 }
 0x1fd   :  { %p434_p5 = scmp.ne.s32.totalorder %s578_s4, %s433_s24  ;;  %p437_p6 = scmp.lt.u32.totalorder %s433_s24, %s578_s4 }
 0x1ff   :  { %p439_p7 = pnand %p437_p6, %p434_p5 }
 0x201   :  { %442 = shalt.err (!%p439_p7)
}
 0x202   :  { %368 = dma.vmem_to_hbm [thread:$0]  %s366_s19, 16, %s578_s4, [#allocation5]  }
 0x203   :  { %s474_s5 = smov [#allocation2]  }
 0x204   :  { %s355_s6 = sshll.u32 %s474_s5, 4  ;;  %s356_s6 = int_to_ptr.vmem [resolvable:$true] %s355_s6 }
 0x205   :  { %s443_s7 = scalar_lea.vmem %s356_s6, 16  ;;  %s447_s8 = scalar_lea.vmem %s356_s6, 32 }
 0x206   :  { %p444_p8 = scmp.ne.s32.totalorder %s356_s6, %s443_s7  ;;  %p448_p9 = scmp.lt.s32.totalorder %s356_s6, %s356_s6 }
 0x207   :  { %p449_p10 = scmp.lt.s32.totalorder %s447_s8, %s443_s7 }
 0x209   :  { %p450_p11 = por %p449_p10, %p448_p9 }
 0x20b   :  { %p451_p12 = pnand %p450_p11, %p444_p8 }
 0x287   :  { %v321_v7 = vpop.xlane.xlu1 %320 }
 0x288   :  { %v322_v8 = vrot.slane %v321_v7, 4 }
 0x28a   :  { %v323_v18 = vadd.f32 %v322_v8, %v321_v7 }
 0x28c   :  { %v324_v19 = vrot.slane %v323_v18, 2 }
 0x28e   :  { %v325_v20 = vadd.f32 %v324_v19, %v323_v18 }
 0x290   :  { %v326_v21 = vrot.slane %v325_v20, 1 }
 0x292   :  { %v327_v22 = vadd.f32 %v326_v21, %v325_v20 }
 0x294   :  { %329 = vst.msk [vmem:[#allocation2] sm:$0x1] %vm328_vm7, %v327_v22 }
 0x295   :  { %454 = shalt.err (!%p451_p12)
}
 0x296   :  { %s455_s10 = scalar_lea.hbm %s577_s3, 16 }
 0x297   :  { %p456_p13 = scmp.ne.s32.totalorder %s577_s3, %s455_s10  ;;  %p459_p0 = scmp.lt.u32.totalorder %s455_s10, %s577_s3 }
 0x299   :  { %p461_p1 = pnand %p459_p0, %p456_p13 }
 0x29b   :  { %464 = shalt.err (!%p461_p1)
}
 0x29c   :  { %358 = dma.vmem_to_hbm [thread:$0]  %s356_s6, 16, %s577_s3, [#allocation3]  }
 0x29d   :  { %465 = dma.done.wait [#allocation3], 16  }
 0x29e   :  { %466 = vsyncadd [#allocation3], 4294967280 }
 0x29f   :  { %467 = dma.done.wait [#allocation5], 16  }
 0x2a0   :  { %468 = vsyncadd [#allocation5], 4294967280 }
 0x2a1   :  { %375 = vsyncpa [#allocation3], 1 }
 0x2a2   :  { %376 = vsyncpa [#allocation5], 1 }

</bundles_post_ra>
